<compile_context>
chip_gen: v5e
topology: v5e:2x2
jax: 0.10.0
libtpu: 0.0.40
codegen_flags: <defaults>
</compile_context>

<pallas_src>
import functools

import jax
import jax.numpy as jnp
import numpy as np
from jax.experimental import pallas as pl
from jax.experimental.pallas import tpu as pltpu


def _round_up(x, m):
    return (x + m - 1) // m * m


def _activation(x, non_linearity):
    if non_linearity == "relu":
        return jnp.maximum(x, 0.0)
    if non_linearity == "h_swish":
        return x * jnp.clip(x + 3.0, 0.0, 6.0) * (1.0 / 6.0)
    return x


def _tpu_tuning():
    """Per-generation defaults: (vmem_limit_bytes, tile_m, default compute dtype)."""
    kind = ""
    try:
        kind = jax.devices()[0].device_kind.lower()
    except Exception:
        pass
    is_v7 = "v7" in kind
    is_v5e = ("v5" in kind) and (("lite" in kind) or ("v5e" in kind))
    if is_v7:
        # v7x: 64 MiB physical VMEM -> conservative scoped limit, smaller M
        # tiles (also keeps >=2 parallel M tiles for the 2 TensorCores).
        return 48 * 1024 * 1024, 256, jnp.float32
    # v5e / v6e: 128 MiB physical VMEM -> bigger tiles, higher scoped limit.
    default_dtype = jnp.bfloat16 if is_v5e else jnp.float32
    return 96 * 1024 * 1024, 512, default_dtype


# ----------------------------------------------------------------------------
# Kernels
# ----------------------------------------------------------------------------
def conv_stats_kernel(p_ref, w_ref, y_ref, sum_ref, ssq_ref, acc_ref):
    """One (M, Cout) conv tile with K-tiled reduction + per-M-tile BN partials.

    grid = (n_m [parallel], n_co [parallel], n_k [arbitrary, innermost]).
    p_ref:   (tm, tk)      im2col patches tile
    w_ref:   (tk, tco)     reshaped weights tile
    y_ref:   (tm, tco)     raw conv output tile (written at last K step)
    sum_ref: (1, 1, tco)   per-(M-tile, Cout-tile) partial sum
    ssq_ref: (1, 1, tco)   per-(M-tile, Cout-tile) partial sum of squares
    acc_ref: (tm, tco) f32 VMEM scratch accumulator across the K axis
    """
    k = pl.program_id(2)

    @pl.when(k == 0)
    def _():
        acc_ref[...] = jnp.zeros_like(acc_ref)

    acc_ref[...] += jnp.dot(p_ref[...], w_ref[...],
                            preferred_element_type=jnp.float32)

    @pl.when(k == pl.num_programs(2) - 1)
    def _():
        acc = acc_ref[...]
        y_ref[...] = acc.astype(y_ref.dtype)
        # Zero-padded M rows / K columns of P produce exactly-zero rows of
        # `acc`, so they contribute nothing to the statistics -> no mask.
        sum_ref[...] = jnp.sum(acc, axis=0, keepdims=True)[None]
        ssq_ref[...] = jnp.sum(acc * acc, axis=0, keepdims=True)[None]


def bn_apply_kernel(y_ref, scale_ref, shift_ref, o_ref, *, non_linearity):
    """Mem-bound second pass: y*scale + shift (+ activation), large blocks."""
    acc = y_ref[...].astype(jnp.float32) * scale_ref[...] + shift_ref[...]
    o_ref[...] = _activation(acc, non_linearity).astype(o_ref.dtype)


def conv_bias_act_kernel(p_ref, w_ref, b_ref, o_ref, acc_ref, *, non_linearity):
    """No-BN path: K-tiled conv tile + bias + activation in one pass."""
    k = pl.program_id(2)

    @pl.when(k == 0)
    def _():
        acc_ref[...] = jnp.zeros_like(acc_ref)

    acc_ref[...] += jnp.dot(p_ref[...], w_ref[...],
                            preferred_element_type=jnp.float32)

    @pl.when(k == pl.num_programs(2) - 1)
    def _():
        acc = acc_ref[...] + b_ref[...]
        o_ref[...] = _activation(acc, non_linearity).astype(o_ref.dtype)


# ----------------------------------------------------------------------------
# Wrapper
# ----------------------------------------------------------------------------
def basic_conv2d(x_nchw, weight_oihw, bias, gamma=None, beta=None, *, stride=1,
                 padding=0, groups=1, batch_norm=True, non_linearity=None,
                 eps=1e-5, compute_dtype=None, tile_m=None):
    assert groups == 1, "groups > 1 not supported (see TODO)"
    n, cin, h, w = x_nchw.shape
    cout, cin_w, kh, kw = weight_oihw.shape
    assert cin_w == cin
    hout = (h + 2 * padding - kh) // stride + 1
    wout = (w + 2 * padding - kw) // stride + 1
    nl = non_linearity.lower() if non_linearity else None
    out_dtype = x_nchw.dtype

    vmem_limit, tm_default, dtype_default = _tpu_tuning()
    if compute_dtype is None:
        compute_dtype = dtype_default
    if tile_m is None:
        tile_m = tm_default
    use_bf16 = np.dtype(compute_dtype) == np.dtype(jnp.bfloat16)
    y_dtype = jnp.bfloat16 if use_bf16 else jnp.float32

    # --- glue (plain XLA): NCHW->NHWC, pad, im2col, weight reshape/pad -------
    x_nhwc = jnp.transpose(x_nchw, (0, 2, 3, 1))
    x_pad = jnp.pad(x_nhwc,
                    ((0, 0), (padding, padding), (padding, padding), (0, 0)))
    taps = []
    for i in range(kh):
        for j in range(kw):
            taps.append(x_pad[:,
                              i:i + (hout - 1) * stride + 1:stride,
                              j:j + (wout - 1) * stride + 1:stride, :])
    kc = kh * kw * cin
    m = n * hout * wout
    p = jnp.concatenate(taps, axis=-1).reshape(m, kc)

    coutp = _round_up(cout, 128)                 # lane-dense output channels
    tco = 256 if coutp % 256 == 0 else 128       # fill the 256-wide MXU
    tm = min(tile_m, _round_up(m, 8))
    m_pad = _round_up(m, tm)
    n_m = m_pad // tm
    n_co = coutp // tco

    # K (reduction) tiling bounds per-step VMEM independent of Cin.
    if kc <= 2048:
        tk, kc_pad = kc, kc
    else:
        tk = 512
        kc_pad = _round_up(kc, tk)
    n_k = kc_pad // tk

    # Zero-padding along M and K: padded rows/cols contribute exactly 0 to the
    # conv output and to the BN statistics.
    p = jnp.pad(p, ((0, m_pad - m), (0, kc_pad - kc))).astype(compute_dtype)
    w_mat = jnp.transpose(weight_oihw, (2, 3, 1, 0)).reshape(kc, cout)
    w_mat = jnp.pad(w_mat,
                    ((0, kc_pad - kc), (0, coutp - cout))).astype(compute_dtype)

    # --- BlockSpecs for the conv (phase-1) pass ------------------------------
    # Grid order (M, Cout, K): M outermost so P is streamed from HBM exactly
    # once per call; the (small) weight matrix is re-streamed per M tile.
    p_spec = pl.BlockSpec((tm, tk), lambda mi, co, k: (mi, k))
    w_spec = pl.BlockSpec((tk, tco), lambda mi, co, k: (k, co))
    row_spec = pl.BlockSpec((1, tco), lambda mi, co, k: (0, co))
    y_spec = pl.BlockSpec((tm, tco), lambda mi, co, k: (mi, co))
    stat_spec = pl.BlockSpec((1, 1, tco), lambda mi, co, k: (mi, 0, co))

    conv_params = pltpu.CompilerParams(
        dimension_semantics=("parallel", "parallel", "arbitrary"),
        vmem_limit_bytes=vmem_limit)

    if batch_norm:
        # Conv bias is cancelled exactly by training-mode BN mean subtraction,
        # so it is not applied.
        y, s1, s2 = pl.pallas_call(
            conv_stats_kernel,
            grid=(n_m, n_co, n_k),
            in_specs=[p_spec, w_spec],
            out_specs=(y_spec, stat_spec, stat_spec),
            out_shape=(jax.ShapeDtypeStruct((m_pad, coutp), y_dtype),
                       jax.ShapeDtypeStruct((n_m, 1, coutp), jnp.float32),
                       jax.ShapeDtypeStruct((n_m, 1, coutp), jnp.float32)),
            scratch_shapes=[pltpu.VMEM((tm, tco), jnp.float32)],
            compiler_params=conv_params,
        )(p, w_mat)

        # Tiny per-channel finalize in plain JAX: reduce per-M-tile partials
        # and fold gamma * rsqrt(var + eps) into a single scale/shift.
        s1 = jnp.sum(s1, axis=0)               # (1, coutp)
        s2 = jnp.sum(s2, axis=0)               # (1, coutp)
        mean = s1 / m
        var = jnp.maximum(s2 / m - mean * mean, 0.0)   # biased variance
        inv = jax.lax.rsqrt(var + eps)
        gamma_p = jnp.pad(gamma.astype(jnp.float32),
                          (0, coutp - cout)).reshape(1, coutp)
        beta_p = jnp.pad(beta.astype(jnp.float32),
                         (0, coutp - cout)).reshape(1, coutp)
        scale = gamma_p * inv
        shift = beta_p - mean * scale

        # Phase 2: mem-bound scale/shift/activation with large lane-dense
        # blocks (full channel width when it fits in one block).
        if coutp <= 1024:
            tco2 = coutp
        elif coutp % 512 == 0:
            tco2 = 512
        elif coutp % 256 == 0:
            tco2 = 256
        else:
            tco2 = 128
        n_co2 = coutp // tco2

        kern2 = functools.partial(bn_apply_kernel, non_linearity=nl)
        out = pl.pallas_call(
            kern2,
            grid=(n_m, n_co2),
            in_specs=[pl.BlockSpec((tm, tco2), lambda mi, co: (mi, co)),
                      pl.BlockSpec((1, tco2), lambda mi, co: (0, co)),
                      pl.BlockSpec((1, tco2), lambda mi, co: (0, co))],
            out_specs=pl.BlockSpec((tm, tco2), lambda mi, co: (mi, co)),
            out_shape=jax.ShapeDtypeStruct((m_pad, coutp), out_dtype),
            compiler_params=pltpu.CompilerParams(
                dimension_semantics=("parallel", "parallel"),
                vmem_limit_bytes=vmem_limit),
        )(y, scale, shift)
    else:
        bias_p = jnp.pad(bias.astype(jnp.float32),
                         (0, coutp - cout)).reshape(1, coutp)
        kern = functools.partial(conv_bias_act_kernel, non_linearity=nl)
        out = pl.pallas_call(
            kern,
            grid=(n_m, n_co, n_k),
            in_specs=[p_spec, w_spec, row_spec],
            out_specs=y_spec,
            out_shape=jax.ShapeDtypeStruct((m_pad, coutp), out_dtype),
            scratch_shapes=[pltpu.VMEM((tm, tco), jnp.float32)],
            compiler_params=conv_params,
        )(p, w_mat, bias_p)

    out = out[:m, :cout].reshape(n, hout, wout, cout)
    return jnp.transpose(out, (0, 3, 1, 2))  # NHWC -> NCHW


# ----------------------------------------------------------------------------
# Pure-JAX reference (matches the PyTorch module's forward semantics)
# ----------------------------------------------------------------------------
def reference(x, weight, bias, gamma, beta, *, stride, padding, batch_norm,
              non_linearity, eps=1e-5):
    y = jax.lax.conv_general_dilated(
        x, weight, window_strides=(stride, stride),
        padding=[(padding, padding), (padding, padding)],
        dimension_numbers=("NCHW", "OIHW", "NCHW"))
    y = y + bias[None, :, None, None]
    if batch_norm:
        mean = jnp.mean(y, axis=(0, 2, 3), keepdims=True)
        var = jnp.var(y, axis=(0, 2, 3), keepdims=True)  # biased
        y = (y - mean) * jax.lax.rsqrt(var + eps)
        y = y * gamma[None, :, None, None] + beta[None, :, None, None]
    nl = non_linearity.lower() if non_linearity else None
    if nl == "relu":
        y = jnp.maximum(y, 0.0)
    elif nl == "h_swish":
        y = y * jnp.clip(y + 3.0, 0.0, 6.0) / 6.0
    return y


if __name__ == "__main__":
    # BasicConv2d(in_channels=4, out_channels=8, kernel_size=3, stride=1,
    #             padding=1, groups=1, batch_norm=True, non_linearity='h_swish')
    N, CIN, H, W = 2, 4, 16, 16
    COUT, K, STRIDE, PAD = 8, 3, 1, 1

    key = jax.random.PRNGKey(0)
    kx, kw_, kb, kg, kbt = jax.random.split(key, 5)

    x = jax.random.normal(kx, (N, CIN, H, W), jnp.float32)
    weight = jax.random.normal(kw_, (COUT, CIN, K, K), jnp.float32) * 0.1
    bias = jax.random.normal(kb, (COUT,), jnp.float32) * 0.1
    gamma = 1.0 + 0.1 * jax.random.normal(kg, (COUT,), jnp.float32)
    beta = 0.1 * jax.random.normal(kbt, (COUT,), jnp.float32)

    # --- case 1: BN + h_swish, f32 MXU operands (tight tolerance) -----------
    out = basic_conv2d(x, weight, bias, gamma, beta, stride=STRIDE,
                       padding=PAD, groups=1, batch_norm=True,
                       non_linearity="h_swish",
                       compute_dtype=jnp.float32)
    out = jax.block_until_ready(out)
    ref = reference(x, weight, bias, gamma, beta, stride=STRIDE, padding=PAD,
                    batch_norm=True, non_linearity="h_swish")
    ref = jax.block_until_ready(ref)
    assert out.shape == (N, COUT, H, W), out.shape
    np.testing.assert_allclose(np.asarray(out), np.asarray(ref),
                               rtol=1e-4, atol=1e-4)

    # --- case 2: same config, bf16 MXU operands + bf16 y (loose tolerance) --
    out_bf16 = basic_conv2d(x, weight, bias, gamma, beta, stride=STRIDE,
                            padding=PAD, groups=1, batch_norm=True,
                            non_linearity="h_swish",
                            compute_dtype=jnp.bfloat16)
    out_bf16 = jax.block_until_ready(out_bf16)
    np.testing.assert_allclose(np.asarray(out_bf16), np.asarray(ref),
                               rtol=5e-2, atol=5e-2)

    # --- case 3: no BN, ReLU, stride 2, no padding (exercises other kernel) --
    out2 = basic_conv2d(x, weight, bias, stride=2, padding=0, groups=1,
                        batch_norm=False, non_linearity="relu",
                        compute_dtype=jnp.float32)
    out2 = jax.block_until_ready(out2)
    ref2 = reference(x, weight, bias, gamma, beta, stride=2, padding=0,
                     batch_norm=False, non_linearity="relu")
    ref2 = jax.block_until_ready(ref2)
    assert out2.shape == ref2.shape, (out2.shape, ref2.shape)
    np.testing.assert_allclose(np.asarray(out2), np.asarray(ref2),
                               rtol=1e-4, atol=1e-4)

    print("KERNEL_OK")
</pallas_src>

<mosaic_0001>
module attributes {stable_mosaic.version = 11 : i64} {
  func.func @conv_stats_kernel(%arg0: i32, %arg1: i32, %arg2: i32, %arg3: memref<512x36xf32, #tpu.memory_space<vmem>>, %arg4: memref<36x128xf32, #tpu.memory_space<vmem>>, %arg5: memref<512x128xf32, #tpu.memory_space<vmem>>, %arg6: memref<1x1x128xf32, #tpu.memory_space<vmem>>, %arg7: memref<1x1x128xf32, #tpu.memory_space<vmem>>, %arg8: memref<512x128xf32, #tpu.memory_space<vmem>>) attributes {dimension_semantics = [#tpu.dimension_semantics<parallel>, #tpu.dimension_semantics<parallel>, #tpu.dimension_semantics<arbitrary>], iteration_bounds = array<i64: 1, 1, 1>, scalar_prefetch = 0 : i64, scratch_operands = 1 : i64, tpu.core_type = #tpu.core_type<tc>, window_params = [{transform_indices = @transform_0, window_bounds = array<i64: 512, 36>}, {transform_indices = @transform_1, window_bounds = array<i64: 36, 128>}, {transform_indices = @transform_2, window_bounds = array<i64: 512, 128>}, {transform_indices = @transform_3, window_bounds = array<i64: 1, 1, 128>}, {transform_indices = @transform_4, window_bounds = array<i64: 1, 1, 128>}]} {
    %c0_i32 = arith.constant 0 : i32
    %0 = arith.cmpi eq, %arg2, %c0_i32 : i32
    %1 = arith.extui %0 : i1 to i32
    %c0_i32_0 = arith.constant 0 : i32
    %2 = arith.cmpi ne, %1, %c0_i32_0 : i32
    scf.if %2 {
      %cst_10 = arith.constant 0.000000e+00 : f32
      %12 = vector.broadcast %cst_10 : f32 to vector<512x128xf32>
      %c0_11 = arith.constant 0 : index
      %c0_12 = arith.constant 0 : index
      %13 = vector.load %arg8[%c0_11, %c0_12] : memref<512x128xf32, #tpu.memory_space<vmem>>, vector<512x128xf32>
      tpu.vector_store %arg8[%c0_11, %c0_12], %12 {strides = array<i32>} : memref<512x128xf32, #tpu.memory_space<vmem>>, vector<512x128xf32>,
    } else {
    }
    %c0 = arith.constant 0 : index
    %c0_1 = arith.constant 0 : index
    %3 = vector.load %arg8[%c0, %c0_1] : memref<512x128xf32, #tpu.memory_space<vmem>>, vector<512x128xf32>
    %c0_2 = arith.constant 0 : index
    %c0_3 = arith.constant 0 : index
    %4 = vector.load %arg3[%c0_2, %c0_3] : memref<512x36xf32, #tpu.memory_space<vmem>>, vector<512x36xf32>
    %c0_4 = arith.constant 0 : index
    %c0_5 = arith.constant 0 : index
    %5 = vector.load %arg4[%c0_4, %c0_5] : memref<36x128xf32, #tpu.memory_space<vmem>>, vector<36x128xf32>
    %cst = arith.constant dense<0.000000e+00> : vector<512x128xf32>
    %6 = tpu.matmul %4, %5, %cst {dimension_numbers = #tpu.dot_dimension_numbers<[1], [0], [0], [1], [0, 0, 1, 1], [], []>} : vector<512x36xf32>, vector<36x128xf32>, vector<512x128xf32> -> vector<512x128xf32>
    %7 = arith.addf %3, %6 : vector<512x128xf32>
    %c0_6 = arith.constant 0 : index
    %c0_7 = arith.constant 0 : index
    %8 = vector.load %arg8[%c0_6, %c0_7] : memref<512x128xf32, #tpu.memory_space<vmem>>, vector<512x128xf32>
    tpu.vector_store %arg8[%c0_6, %c0_7], %7 {strides = array<i32>} : memref<512x128xf32, #tpu.memory_space<vmem>>, vector<512x128xf32>,
    %c0_i32_8 = arith.constant 0 : i32
    %9 = arith.cmpi eq, %arg2, %c0_i32_8 : i32
    %10 = arith.extui %9 : i1 to i32
    %c0_i32_9 = arith.constant 0 : i32
    %11 = arith.cmpi ne, %10, %c0_i32_9 : i32
    scf.if %11 {
      %c0_10 = arith.constant 0 : index
      %c0_11 = arith.constant 0 : index
      %12 = vector.load %arg8[%c0_10, %c0_11] : memref<512x128xf32, #tpu.memory_space<vmem>>, vector<512x128xf32>
      %c0_12 = arith.constant 0 : index
      %c0_13 = arith.constant 0 : index
      %13 = vector.load %arg5[%c0_12, %c0_13] : memref<512x128xf32, #tpu.memory_space<vmem>>, vector<512x128xf32>
      tpu.vector_store %arg5[%c0_12, %c0_13], %12 {strides = array<i32>} : memref<512x128xf32, #tpu.memory_space<vmem>>, vector<512x128xf32>,
      %cst_14 = arith.constant dense<0.000000e+00> : vector<128xf32>
      %14 = vector.multi_reduction <add>, %12, %cst_14 [0] : vector<512x128xf32> to vector<128xf32>
      %15 = vector.shape_cast %14 : vector<128xf32> to vector<1x128xf32>
      %16 = vector.shape_cast %15 : vector<1x128xf32> to vector<1x1x128xf32>
      %c0_15 = arith.constant 0 : index
      %c0_16 = arith.constant 0 : index
      %c0_17 = arith.constant 0 : index
      %17 = vector.load %arg6[%c0_15, %c0_16, %c0_17] : memref<1x1x128xf32, #tpu.memory_space<vmem>>, vector<1x1x128xf32>
      tpu.vector_store %arg6[%c0_15, %c0_16, %c0_17], %16 {strides = array<i32>} : memref<1x1x128xf32, #tpu.memory_space<vmem>>, vector<1x1x128xf32>,
      %18 = arith.mulf %12, %12 : vector<512x128xf32>
      %cst_18 = arith.constant dense<0.000000e+00> : vector<128xf32>
      %19 = vector.multi_reduction <add>, %18, %cst_18 [0] : vector<512x128xf32> to vector<128xf32>
      %20 = vector.shape_cast %19 : vector<128xf32> to vector<1x128xf32>
      %21 = vector.shape_cast %20 : vector<1x128xf32> to vector<1x1x128xf32>
      %c0_19 = arith.constant 0 : index
      %c0_20 = arith.constant 0 : index
      %c0_21 = arith.constant 0 : index
      %22 = vector.load %arg7[%c0_19, %c0_20, %c0_21] : memref<1x1x128xf32, #tpu.memory_space<vmem>>, vector<1x1x128xf32>
      tpu.vector_store %arg7[%c0_19, %c0_20, %c0_21], %21 {strides = array<i32>} : memref<1x1x128xf32, #tpu.memory_space<vmem>>, vector<1x1x128xf32>,
    } else {
    }
    return
  }
  func.func @transform_0(%arg0: i32, %arg1: i32, %arg2: i32) -> (i32, i32) {
    %c0_i32 = arith.constant 0 : i32
    return %arg0, %arg2 : i32, i32
  }
  func.func @transform_1(%arg0: i32, %arg1: i32, %arg2: i32) -> (i32, i32) {
    %c0_i32 = arith.constant 0 : i32
    return %arg2, %arg1 : i32, i32
  }
  func.func @transform_2(%arg0: i32, %arg1: i32, %arg2: i32) -> (i32, i32) {
    %c0_i32 = arith.constant 0 : i32
    return %arg0, %arg1 : i32, i32
  }
  func.func @transform_3(%arg0: i32, %arg1: i32, %arg2: i32) -> (i32, i32, i32) {
    %c0_i32 = arith.constant 0 : i32
    %c0_i32_0 = arith.constant 0 : i32
    return %arg0, %c0_i32, %arg1 : i32, i32, i32
  }
  func.func @transform_4(%arg0: i32, %arg1: i32, %arg2: i32) -> (i32, i32, i32) {
    %c0_i32 = arith.constant 0 : i32
    %c0_i32_0 = arith.constant 0 : i32
    return %arg0, %c0_i32, %arg1 : i32, i32, i32
  }
}

</mosaic_0001>

<bundles_post_ra>
// kernel: tpu_custom_call.1
= control target key start
LH: loop header
LB: loop body
LE: loop exit
PB: predicated region body
PF: predicated region fallthrough
CT: control target
= control target key end

     0   :  { %10 = vsyncpa [#allocation4], 0  ;;  %vm410_vm0 = vcmask 1043456   ;;  %s1894_s0 = inlined_call_operand.vmem [shape: f32[512,36], index: 0, kind: input, shape index: {}]   ;;  %s1895_s1 = inlined_call_operand.vmem [shape: f32[36,128], index: 1, kind: input, shape index: {}]   ;;  %s1896_s2 = inlined_call_operand.hbm [shape: f32[512,128], index: 2, kind: output, shape index: {0}]   ;;  %s1897_s3 = inlined_call_operand.hbm [shape: f32[1,1,128], index: 3, kind: output, shape index: {1}]   ;;  %s1898_s4 = inlined_call_operand.hbm [shape: f32[1,1,128], index: 4, kind: output, shape index: {2}]  }
   0x1   :  { %v216_v0 = vld [vmem:[%s1895_s1 + $0x20] sm:$0xf]  ;;  %v215_v1 = vld [vmem:[%s1895_s1 + $0x18] sm:$0xff]  ;;  %v214_v2 = vld [vmem:[%s1895_s1 + $0x10] sm:$0xff] }
   0x2   :  { %1135 = vmatpush.msk.msra.mxu0 %vm410_vm0, %v216_v0  ;;  %1200 = vmatpush.msk.msra.mxu1 %vm410_vm0, %v216_v0 }
   0x3   :  { %1201 = vmatpush.msk.msra.mxu2 %vm410_vm0, %v216_v0  ;;  %1202 = vmatpush.msk.msra.mxu3 %vm410_vm0, %v216_v0 }
   0x4   :  { %426 = vmatpush.msra.mxu0 %v215_v1  ;;  %1203 = vmatpush.msra.mxu1 %v215_v1 }
   0x5   :  { %11 = vsyncpa [#allocation6], 0  ;;  %v213_v3 = vld [vmem:[%s1895_s1 + $0x8] sm:$0xff]  ;;  %1204 = vmatpush.msra.mxu2 %v215_v1  ;;  %1205 = vmatpush.msra.mxu3 %v215_v1  ;;  %v212_v4 = vld [vmem:[%s1895_s1] sm:$0xff]  ;;  %vm217_vm1 = vcmask 293888   ;;  %s1092_s21 = sshll.u32 %s1896_s2, 4  ;;  %s1093_s21 = int_to_ptr.hbm [resolvable:$true] %s1092_s21 }
   0x6   :  { %427 = vmatpush.msra.mxu0 %v214_v2  ;;  %1206 = vmatpush.msra.mxu1 %v214_v2  ;;  %v148_v5 = vld [vmem:[%s1894_s0] sm:$0xff]  ;;  %v149_v7 = vld [vmem:[%s1894_s0 + $0x8] sm:$0xff]  ;;  %v150_v9 = vld [vmem:[%s1894_s0 + $0x10] sm:$0xff]  ;;  %s1297_s2 = smov 128   ;;  %s1298_s22 = smov 8  }
   0x7   :  { %1207 = vmatpush.msra.mxu2 %v214_v2  ;;  %1208 = vmatpush.msra.mxu3 %v214_v2  ;;  %v164_v6 = vld [vmem:[%s1894_s0 + $0x80] sm:$0xff]  ;;  %v165_v8 = vld [vmem:[%s1894_s0 + $0x88] sm:$0xff]  ;;  %v166_v10 = vld [vmem:[%s1894_s0 + $0x90] sm:$0xff]  ;;  %s1299_s23 = smov [#allocation5]   ;;  %s1106_s27 = sshll.u32 %s1897_s3, 4  ;;  %s1107_s27 = int_to_ptr.hbm [resolvable:$true] %s1106_s27 }
   0x8   :  { %428 = vmatpush.msra.mxu0 %v213_v3  ;;  %1209 = vmatpush.msra.mxu1 %v213_v3  ;;  %v151_v11 = vld [vmem:[%s1894_s0 + $0x18] sm:$0xff]  ;;  %v180_v13 = vld [vmem:[%s1894_s0 + $0x100] sm:$0xff]  ;;  %v181_v16 = vld [vmem:[%s1894_s0 + $0x108] sm:$0xff]  ;;  %s1104_s24 = sshll.u32 %s1299_s23, 4  ;;  %s1300_s28 = smov [#allocation7]   ;;  %s1105_s24 = int_to_ptr.vmem [resolvable:$true] %s1104_s24 }
   0x9   :  { %1210 = vmatpush.msra.mxu2 %v213_v3  ;;  %1211 = vmatpush.msra.mxu3 %v213_v3  ;;  %v167_v12 = vld [vmem:[%s1894_s0 + $0x98] sm:$0xff]  ;;  %v152_v14 = vld [vmem:[%s1894_s0 + $0x20] sm:$0xff]  ;;  %v153_v17 = vld [vmem:[%s1894_s0 + $0x28] sm:$0xff]  ;;  %s1115_s1 = sshll.u32 %s1300_s28, 4  ;;  %s1117_s5 = sshll.u32 %s1898_s4, 4  ;;  %s1116_s1 = int_to_ptr.vmem [resolvable:$true] %s1115_s1  ;;  %s1118_s5 = int_to_ptr.hbm [resolvable:$true] %s1117_s5 }
   0xa   :  { %429 = vmatpush.msra.mxu0 %v212_v4  ;;  %1212 = vmatpush.msra.mxu1 %v212_v4  ;;  %v168_v15 = vld [vmem:[%s1894_s0 + $0xa0] sm:$0xff]  ;;  %v169_v18 = vld [vmem:[%s1894_s0 + $0xa8] sm:$0xff]  ;;  %v182_v19 = vld [vmem:[%s1894_s0 + $0x110] sm:$0xff] }
   0xb   :  { %1136 = vmatmul.msk.f32.vlgmr.msra.gmra.mxu0 %vm217_vm1, %v148_v5  ;;  %1152 = vmatmul.msk.f32.vlgmr.msra.gmra.mxu1 %vm217_vm1, %v164_v6  ;;  %v154_v20 = vld [vmem:[%s1894_s0 + $0x30] sm:$0xff]  ;;  %v183_v22 = vld [vmem:[%s1894_s0 + $0x118] sm:$0xff]  ;;  %v184_v25 = vld [vmem:[%s1894_s0 + $0x120] sm:$0xff] }
   0xc   :  { %1213 = vmatpush.msra.mxu2 %v212_v4  ;;  %1214 = vmatpush.msra.mxu3 %v212_v4  ;;  %v170_v21 = vld [vmem:[%s1894_s0 + $0xb0] sm:$0xff]  ;;  %v155_v23 = vld [vmem:[%s1894_s0 + $0x38] sm:$0xff]  ;;  %v196_v26 = vld [vmem:[%s1894_s0 + $0x180] sm:$0xff] }
   0xd   :  { %1168 = vmatmul.msk.f32.vlgmr.msra.gmra.mxu2 %vm217_vm1, %v180_v13  ;;  %v171_v24 = vld [vmem:[%s1894_s0 + $0xb8] sm:$0xff]  ;;  %1184 = vmatmul.msk.f32.vlgmr.msra.gmra.mxu3 %vm217_vm1, %v196_v26  ;;  %v156_v27 = vld [vmem:[%s1894_s0 + $0x40] sm:$0xff]  ;;  %v185_v29 = vld [vmem:[%s1894_s0 + $0x128] sm:$0xff] }
   0xe   :  { %v172_v28 = vld [vmem:[%s1894_s0 + $0xc0] sm:$0xff]  ;;  %v197_v30 = vld [vmem:[%s1894_s0 + $0x188] sm:$0xff]  ;;  %v186_v33 = vld [vmem:[%s1894_s0 + $0x130] sm:$0xff] }
   0xf   :  { %v157_v31 = vld [vmem:[%s1894_s0 + $0x48] sm:$0xff]  ;;  %v198_v34 = vld [vmem:[%s1894_s0 + $0x190] sm:$0xff]  ;;  %v187_v37 = vld [vmem:[%s1894_s0 + $0x138] sm:$0xff] }
  0x10   :  { %v173_v32 = vld [vmem:[%s1894_s0 + $0xc8] sm:$0xff]  ;;  %v158_v35 = vld [vmem:[%s1894_s0 + $0x50] sm:$0xff]  ;;  %v199_v38 = vld [vmem:[%s1894_s0 + $0x198] sm:$0xff] }
  0x11   :  { %v174_v36 = vld [vmem:[%s1894_s0 + $0xd0] sm:$0xff]  ;;  %v159_v39 = vld [vmem:[%s1894_s0 + $0x58] sm:$0xff]  ;;  %v188_v41 = vld [vmem:[%s1894_s0 + $0x140] sm:$0xff] }
  0x12   :  { %v175_v40 = vld [vmem:[%s1894_s0 + $0xd8] sm:$0xff]  ;;  %v200_v42 = vld [vmem:[%s1894_s0 + $0x1a0] sm:$0xff]  ;;  %v189_v45 = vld [vmem:[%s1894_s0 + $0x148] sm:$0xff] }
  0x13   :  { %1137 = vmatmul.msk.f32.gmra.mxu0 %vm217_vm1, %v149_v7  ;;  %1153 = vmatmul.msk.f32.gmra.mxu1 %vm217_vm1, %v165_v8  ;;  %v160_v43 = vld [vmem:[%s1894_s0 + $0x60] sm:$0xff]  ;;  %v201_v46 = vld [vmem:[%s1894_s0 + $0x1a8] sm:$0xff]  ;;  %v190_v49 = vld [vmem:[%s1894_s0 + $0x150] sm:$0xff] }
  0x14   :  { %v176_v44 = vld [vmem:[%s1894_s0 + $0xe0] sm:$0xff]  ;;  %v161_v47 = vld [vmem:[%s1894_s0 + $0x68] sm:$0xff]  ;;  %v202_v50 = vld [vmem:[%s1894_s0 + $0x1b0] sm:$0xff] }
  0x15   :  { %1169 = vmatmul.msk.f32.gmra.mxu2 %vm217_vm1, %v181_v16  ;;  %1185 = vmatmul.msk.f32.gmra.mxu3 %vm217_vm1, %v197_v30  ;;  %v177_v48 = vld [vmem:[%s1894_s0 + $0xe8] sm:$0xff]  ;;  %v162_v51 = vld [vmem:[%s1894_s0 + $0x70] sm:$0xff]  ;;  %v191_v53 = vld [vmem:[%s1894_s0 + $0x158] sm:$0xff] }
  0x16   :  { %v178_v52 = vld [vmem:[%s1894_s0 + $0xf0] sm:$0xff]  ;;  %v203_v54 = vld [vmem:[%s1894_s0 + $0x1b8] sm:$0xff]  ;;  %v192_v57 = vld [vmem:[%s1894_s0 + $0x160] sm:$0xff] }
  0x17   :  { %v163_v55 = vld [vmem:[%s1894_s0 + $0x78] sm:$0xff]  ;;  %v204_v58 = vld [vmem:[%s1894_s0 + $0x1c0] sm:$0xff]  ;;  %v193_v61 = vld [vmem:[%s1894_s0 + $0x168] sm:$0xff] }
  0x18   :  { %v179_v56 = vld [vmem:[%s1894_s0 + $0xf8] sm:$0xff]  ;;  %v205_v62 = vld [vmem:[%s1894_s0 + $0x1c8] sm:$0xff]  ;;  %v194_v5 = vld [vmem:[%s1894_s0 + $0x170] sm:$0xff] }
  0x19   :  { %v206_v6 = vld [vmem:[%s1894_s0 + $0x1d0] sm:$0xff]  ;;  %v207_v13 = vld [vmem:[%s1894_s0 + $0x1d8] sm:$0xff]  ;;  %v209_v26 = vld [vmem:[%s1894_s0 + $0x1e8] sm:$0xff] }
  0x1a   :  { %v210_v30 = vld [vmem:[%s1894_s0 + $0x1f0] sm:$0xff] }
  0x1b   :  { %1138 = vmatmul.msk.f32.gmra.mxu0 %vm217_vm1, %v150_v9  ;;  %1154 = vmatmul.msk.f32.gmra.mxu1 %vm217_vm1, %v166_v10 }
  0x1d   :  { %1170 = vmatmul.msk.f32.gmra.mxu2 %vm217_vm1, %v182_v19  ;;  %1186 = vmatmul.msk.f32.gmra.mxu3 %vm217_vm1, %v198_v34  ;;  %v208_v19 = vld [vmem:[%s1894_s0 + $0x1e0] sm:$0xff]  ;;  %v211_v34 = vld [vmem:[%s1894_s0 + $0x1f8] sm:$0xff] }
  0x23   :  { %1139 = vmatmul.msk.f32.gmra.mxu0 %vm217_vm1, %v151_v11  ;;  %1155 = vmatmul.msk.f32.gmra.mxu1 %vm217_vm1, %v167_v12  ;;  %v195_v12 = vld [vmem:[%s1894_s0 + $0x178] sm:$0xff]  ;;  %s1296_s0 = smov [#allocation3]  }
  0x24   :  { %s1090_s18 = sshll.u32 %s1296_s0, 4  ;;  %s1091_s18 = int_to_ptr.vmem [resolvable:$true] %s1090_s18 }
  0x25   :  { %1171 = vmatmul.msk.f32.gmra.mxu2 %vm217_vm1, %v183_v22  ;;  %1187 = vmatmul.msk.f32.gmra.mxu3 %vm217_vm1, %v199_v38 }
  0x2b   :  { %1140 = vmatmul.msk.f32.gmra.mxu0 %vm217_vm1, %v152_v14  ;;  %1156 = vmatmul.msk.f32.gmra.mxu1 %vm217_vm1, %v168_v15 }
  0x2d   :  { %1172 = vmatmul.msk.f32.gmra.mxu2 %vm217_vm1, %v184_v25  ;;  %1188 = vmatmul.msk.f32.gmra.mxu3 %vm217_vm1, %v200_v42 }
  0x33   :  { %1141 = vmatmul.msk.f32.gmra.mxu0 %vm217_vm1, %v153_v17  ;;  %1157 = vmatmul.msk.f32.gmra.mxu1 %vm217_vm1, %v169_v18 }
  0x35   :  { %1173 = vmatmul.msk.f32.gmra.mxu2 %vm217_vm1, %v185_v29  ;;  %1189 = vmatmul.msk.f32.gmra.mxu3 %vm217_vm1, %v201_v46 }
  0x3b   :  { %1142 = vmatmul.msk.f32.gmra.mxu0 %vm217_vm1, %v154_v20  ;;  %1158 = vmatmul.msk.f32.gmra.mxu1 %vm217_vm1, %v170_v21 }
  0x3d   :  { %1174 = vmatmul.msk.f32.gmra.mxu2 %vm217_vm1, %v186_v33  ;;  %1190 = vmatmul.msk.f32.gmra.mxu3 %vm217_vm1, %v202_v50 }
  0x43   :  { %1143 = vmatmul.msk.f32.gmra.mxu0 %vm217_vm1, %v155_v23  ;;  %1159 = vmatmul.msk.f32.gmra.mxu1 %vm217_vm1, %v171_v24 }
  0x45   :  { %1175 = vmatmul.msk.f32.gmra.mxu2 %vm217_vm1, %v187_v37  ;;  %1191 = vmatmul.msk.f32.gmra.mxu3 %vm217_vm1, %v203_v54 }
  0x4b   :  { %1144 = vmatmul.msk.f32.gmra.mxu0 %vm217_vm1, %v156_v27  ;;  %1160 = vmatmul.msk.f32.gmra.mxu1 %vm217_vm1, %v172_v28 }
  0x4d   :  { %1176 = vmatmul.msk.f32.gmra.mxu2 %vm217_vm1, %v188_v41  ;;  %1192 = vmatmul.msk.f32.gmra.mxu3 %vm217_vm1, %v204_v58 }
  0x53   :  { %1145 = vmatmul.msk.f32.gmra.mxu0 %vm217_vm1, %v157_v31  ;;  %1161 = vmatmul.msk.f32.gmra.mxu1 %vm217_vm1, %v173_v32 }
  0x55   :  { %1177 = vmatmul.msk.f32.gmra.mxu2 %vm217_vm1, %v189_v45  ;;  %1193 = vmatmul.msk.f32.gmra.mxu3 %vm217_vm1, %v205_v62 }
  0x5b   :  { %1146 = vmatmul.msk.f32.gmra.mxu0 %vm217_vm1, %v158_v35  ;;  %1162 = vmatmul.msk.f32.gmra.mxu1 %vm217_vm1, %v174_v36 }
  0x5d   :  { %1178 = vmatmul.msk.f32.gmra.mxu2 %vm217_vm1, %v190_v49  ;;  %1194 = vmatmul.msk.f32.gmra.mxu3 %vm217_vm1, %v206_v6 }
  0x63   :  { %1147 = vmatmul.msk.f32.gmra.mxu0 %vm217_vm1, %v159_v39  ;;  %1163 = vmatmul.msk.f32.gmra.mxu1 %vm217_vm1, %v175_v40 }
  0x65   :  { %1179 = vmatmul.msk.f32.gmra.mxu2 %vm217_vm1, %v191_v53  ;;  %1195 = vmatmul.msk.f32.gmra.mxu3 %vm217_vm1, %v207_v13 }
  0x6b   :  { %1148 = vmatmul.msk.f32.gmra.mxu0 %vm217_vm1, %v160_v43  ;;  %1164 = vmatmul.msk.f32.gmra.mxu1 %vm217_vm1, %v176_v44 }
  0x6d   :  { %1180 = vmatmul.msk.f32.gmra.mxu2 %vm217_vm1, %v192_v57  ;;  %1196 = vmatmul.msk.f32.gmra.mxu3 %vm217_vm1, %v208_v19 }
  0x73   :  { %1149 = vmatmul.msk.f32.gmra.mxu0 %vm217_vm1, %v161_v47  ;;  %1165 = vmatmul.msk.f32.gmra.mxu1 %vm217_vm1, %v177_v48 }
  0x75   :  { %1181 = vmatmul.msk.f32.gmra.mxu2 %vm217_vm1, %v193_v61  ;;  %1197 = vmatmul.msk.f32.gmra.mxu3 %vm217_vm1, %v209_v26 }
  0x7b   :  { %1150 = vmatmul.msk.f32.gmra.mxu0 %vm217_vm1, %v162_v51  ;;  %1166 = vmatmul.msk.f32.gmra.mxu1 %vm217_vm1, %v178_v52 }
  0x7d   :  { %1182 = vmatmul.msk.f32.gmra.mxu2 %vm217_vm1, %v194_v5  ;;  %1198 = vmatmul.msk.f32.gmra.mxu3 %vm217_vm1, %v210_v30 }
  0x83   :  { %1151 = vmatmul.msk.f32.gmra.mxu0 %vm217_vm1, %v163_v55  ;;  %1167 = vmatmul.msk.f32.gmra.mxu1 %vm217_vm1, %v179_v56 }
  0x85   :  { %1183 = vmatmul.msk.f32.gmra.mxu2 %vm217_vm1, %v195_v12  ;;  %1199 = vmatmul.msk.f32.gmra.mxu3 %vm217_vm1, %v211_v34 }
  0x88   :  { %v431_v59 = vpop.f32.mrf.mxu0  ;;  %v1557_v60 = vpop.f32.mrf.mxu1 }
  0x89   :  { %818 = vst [vmem:[#allocation3] sm:$0xff] %v431_v59  ;;  %v952_v1 = vmul.f32 %v431_v59, %v431_v59 }
  0x8a   :  { %834 = vst [vmem:[#allocation3 + $0x80] sm:$0xff] %v1557_v60 }
  0x90   :  { %v434_v63 = vpop.f32.mrf.mxu0  ;;  %v1568_v0 = vpop.f32.mrf.mxu1 }
  0x91   :  { %819 = vst [vmem:[#allocation3 + $0x8] sm:$0xff] %v434_v63  ;;  %v882_v2 = vadd.f32 %v434_v63, %v431_v59  ;;  %v953_v3 = vmul.f32 %v434_v63, %v434_v63  ;;  %v1601_v24 = vpop.f32.mrf.mxu2  ;;  %v1644_v41 = vpop.f32.mrf.mxu3 }
  0x92   :  { %835 = vst [vmem:[#allocation3 + $0x88] sm:$0xff] %v1568_v0 }
  0x93   :  { %v1016_v4 = vadd.f32 %v953_v3, %v952_v1  ;;  %850 = vst [vmem:[#allocation3 + $0x100] sm:$0xff] %v1601_v24 }
  0x94   :  { %866 = vst [vmem:[#allocation3 + $0x180] sm:$0xff] %v1644_v41 }
  0x98   :  { %v437_v7 = vpop.f32.mrf.mxu0  ;;  %v1579_v8 = vpop.f32.mrf.mxu1 }
  0x99   :  { %820 = vst [vmem:[#allocation3 + $0x10] sm:$0xff] %v437_v7  ;;  %v883_v9 = vadd.f32 %v882_v2, %v437_v7  ;;  %v954_v10 = vmul.f32 %v437_v7, %v437_v7  ;;  %v1616_v29 = vpop.f32.mrf.mxu2  ;;  %v1653_v45 = vpop.f32.mrf.mxu3 }
  0x9a   :  { %836 = vst [vmem:[#allocation3 + $0x90] sm:$0xff] %v1579_v8 }
  0x9b   :  { %v1017_v11 = vadd.f32 %v1016_v4, %v954_v10  ;;  %851 = vst [vmem:[#allocation3 + $0x108] sm:$0xff] %v1616_v29 }
  0x9c   :  { %867 = vst [vmem:[#allocation3 + $0x188] sm:$0xff] %v1653_v45 }
  0xa0   :  { %v440_v14 = vpop.f32.mrf.mxu0  ;;  %v1590_v15 = vpop.f32.mrf.mxu1 }
  0xa1   :  { %821 = vst [vmem:[#allocation3 + $0x18] sm:$0xff] %v440_v14  ;;  %v884_v16 = vadd.f32 %v883_v9, %v440_v14  ;;  %v955_v17 = vmul.f32 %v440_v14, %v440_v14  ;;  %v1626_v33 = vpop.f32.mrf.mxu2  ;;  %v1662_v49 = vpop.f32.mrf.mxu3 }
  0xa2   :  { %837 = vst [vmem:[#allocation3 + $0x98] sm:$0xff] %v1590_v15 }
  0xa3   :  { %v1018_v18 = vadd.f32 %v1017_v11, %v955_v17  ;;  %852 = vst [vmem:[#allocation3 + $0x110] sm:$0xff] %v1626_v33 }
  0xa4   :  { %868 = vst [vmem:[#allocation3 + $0x190] sm:$0xff] %v1662_v49 }
  0xa8   :  { %v443_v20 = vpop.f32.mrf.mxu0  ;;  %v1597_v21 = vpop.f32.mrf.mxu1 }
  0xa9   :  { %822 = vst [vmem:[#allocation3 + $0x20] sm:$0xff] %v443_v20  ;;  %v1599_v22 = vadd.f32 %v884_v16, %v443_v20  ;;  %v956_v23 = vmul.f32 %v443_v20, %v443_v20  ;;  %v1636_v37 = vpop.f32.mrf.mxu2  ;;  %v1671_v53 = vpop.f32.mrf.mxu3 }
  0xaa   :  { %838 = vst [vmem:[#allocation3 + $0xa0] sm:$0xff] %v1597_v21 }
  0xab   :  { %v1604_v25 = vadd.f32 %v1018_v18, %v956_v23  ;;  %853 = vst [vmem:[#allocation3 + $0x118] sm:$0xff] %v1636_v37 }
  0xac   :  { %869 = vst [vmem:[#allocation3 + $0x198] sm:$0xff] %v1671_v53 }
  0xb0   :  { %v1611_v27 = vpop.f32.mrf.mxu0  ;;  %v1613_v28 = vpop.f32.mrf.mxu1 }
  0xb1   :  { %823 = vst [vmem:[#allocation3 + $0x28] sm:$0xff] %v1611_v27  ;;  %v1642_v40 = vpop.f32.mrf.mxu2  ;;  %v1680_v57 = vpop.f32.mrf.mxu3  ;;  %v957_v58 = vmul.f32 %v1611_v27, %v1611_v27  ;;  %v886_v59 = vadd.f32 %v1599_v22, %v1611_v27 }
  0xb2   :  { %839 = vst [vmem:[#allocation3 + $0xa8] sm:$0xff] %v1613_v28 }
  0xb3   :  { %854 = vst [vmem:[#allocation3 + $0x120] sm:$0xff] %v1642_v40  ;;  %v1020_v62 = vadd.f32 %v1604_v25, %v957_v58 }
  0xb4   :  { %870 = vst [vmem:[#allocation3 + $0x1a0] sm:$0xff] %v1680_v57 }
  0xb8   :  { %v449_v31 = vpop.f32.mrf.mxu0  ;;  %v1624_v32 = vpop.f32.mrf.mxu1 }
  0xb9   :  { %824 = vst [vmem:[#allocation3 + $0x30] sm:$0xff] %v449_v31  ;;  %v1651_v44 = vpop.f32.mrf.mxu2  ;;  %v958_v61 = vmul.f32 %v449_v31, %v449_v31  ;;  %v887_v63 = vadd.f32 %v886_v59, %v449_v31  ;;  %v1694_v9 = vpop.f32.mrf.mxu3 }
  0xba   :  { %840 = vst [vmem:[#allocation3 + $0xb0] sm:$0xff] %v1624_v32 }
  0xbb   :  { %855 = vst [vmem:[#allocation3 + $0x128] sm:$0xff] %v1651_v44  ;;  %v1021_v4 = vadd.f32 %v1020_v62, %v958_v61 }
  0xbc   :  { %871 = vst [vmem:[#allocation3 + $0x1a8] sm:$0xff] %v1694_v9 }
  0xc0   :  { %v452_v35 = vpop.f32.mrf.mxu0  ;;  %v1634_v36 = vpop.f32.mrf.mxu1 }
  0xc1   :  { %825 = vst [vmem:[#allocation3 + $0x38] sm:$0xff] %v452_v35  ;;  %v1660_v48 = vpop.f32.mrf.mxu2  ;;  %v959_v1 = vmul.f32 %v452_v35, %v452_v35  ;;  %v888_v5 = vadd.f32 %v887_v63, %v452_v35  ;;  %v1703_v30 = vpop.f32.mrf.mxu3 }
  0xc2   :  { %841 = vst [vmem:[#allocation3 + $0xb8] sm:$0xff] %v1634_v36 }
  0xc3   :  { %856 = vst [vmem:[#allocation3 + $0x130] sm:$0xff] %v1660_v48  ;;  %v1022_v10 = vadd.f32 %v1021_v4, %v959_v1 }
  0xc4   :  { %872 = vst [vmem:[#allocation3 + $0x1b0] sm:$0xff] %v1703_v30 }
  0xc8   :  { %v455_v38 = vpop.f32.mrf.mxu0  ;;  %v1640_v39 = vpop.f32.mrf.mxu1 }
  0xc9   :  { %826 = vst [vmem:[#allocation3 + $0x40] sm:$0xff] %v455_v38  ;;  %v1669_v52 = vpop.f32.mrf.mxu2  ;;  %v960_v6 = vmul.f32 %v455_v38, %v455_v38  ;;  %v889_v11 = vadd.f32 %v888_v5, %v455_v38  ;;  %v968_v5 = vmul.f32 %v1557_v60, %v1557_v60 }
  0xca   :  { %842 = vst [vmem:[#allocation3 + $0xc0] sm:$0xff] %v1640_v39 }
  0xcb   :  { %857 = vst [vmem:[#allocation3 + $0x138] sm:$0xff] %v1669_v52  ;;  %v1023_v13 = vadd.f32 %v1022_v10, %v960_v6  ;;  %v969_v10 = vmul.f32 %v1568_v0, %v1568_v0 }
  0xd0   :  { %v458_v42 = vpop.f32.mrf.mxu0  ;;  %v1649_v43 = vpop.f32.mrf.mxu1 }
  0xd1   :  { %827 = vst [vmem:[#allocation3 + $0x48] sm:$0xff] %v458_v42  ;;  %v1678_v56 = vpop.f32.mrf.mxu2  ;;  %v961_v12 = vmul.f32 %v458_v42, %v458_v42  ;;  %v890_v14 = vadd.f32 %v889_v11, %v458_v42 }
  0xd2   :  { %843 = vst [vmem:[#allocation3 + $0xc8] sm:$0xff] %v1649_v43 }
  0xd3   :  { %858 = vst [vmem:[#allocation3 + $0x140] sm:$0xff] %v1678_v56  ;;  %v1024_v17 = vadd.f32 %v1023_v13, %v961_v12  ;;  %v970_v13 = vmul.f32 %v1579_v8, %v1579_v8 }
  0xd8   :  { %v461_v46 = vpop.f32.mrf.mxu0  ;;  %v1658_v47 = vpop.f32.mrf.mxu1 }
  0xd9   :  { %828 = vst [vmem:[#allocation3 + $0x50] sm:$0xff] %v461_v46  ;;  %v1692_v7 = vpop.f32.mrf.mxu2  ;;  %v962_v16 = vmul.f32 %v461_v46, %v461_v46  ;;  %v891_v18 = vadd.f32 %v890_v14, %v461_v46 }
  0xda   :  { %844 = vst [vmem:[#allocation3 + $0xd0] sm:$0xff] %v1658_v47 }
  0xdb   :  { %859 = vst [vmem:[#allocation3 + $0x148] sm:$0xff] %v1692_v7  ;;  %v1025_v23 = vadd.f32 %v1024_v17, %v962_v16 }
  0xe0   :  { %v464_v50 = vpop.f32.mrf.mxu0  ;;  %v1667_v51 = vpop.f32.mrf.mxu1 }
  0xe1   :  { %829 = vst [vmem:[#allocation3 + $0x58] sm:$0xff] %v464_v50  ;;  %v963_v19 = vmul.f32 %v464_v50, %v464_v50  ;;  %v892_v25 = vadd.f32 %v891_v18, %v464_v50  ;;  %v1701_v27 = vpop.f32.mrf.mxu2 }
  0xe2   :  { %845 = vst [vmem:[#allocation3 + $0xd8] sm:$0xff] %v1667_v51 }
  0xe3   :  { %v1026_v31 = vadd.f32 %v1025_v23, %v963_v19  ;;  %860 = vst [vmem:[#allocation3 + $0x150] sm:$0xff] %v1701_v27 }
  0xe8   :  { %v467_v54 = vpop.f32.mrf.mxu0  ;;  %v1676_v55 = vpop.f32.mrf.mxu1 }
  0xe9   :  { %830 = vst [vmem:[#allocation3 + $0x60] sm:$0xff] %v467_v54  ;;  %v964_v26 = vmul.f32 %v467_v54, %v467_v54  ;;  %v893_v34 = vadd.f32 %v892_v25, %v467_v54  ;;  %v1710_v4 = vpop.f32.mrf.mxu2  ;;  %v1712_v54 = vpop.f32.mrf.mxu3 }
  0xea   :  { %846 = vst [vmem:[#allocation3 + $0xe0] sm:$0xff] %v1676_v55 }
  0xeb   :  { %v1027_v38 = vadd.f32 %v1026_v31, %v964_v26  ;;  %861 = vst [vmem:[#allocation3 + $0x158] sm:$0xff] %v1710_v4  ;;  %v974_v31 = vmul.f32 %v1624_v32, %v1624_v32 }
  0xec   :  { %873 = vst [vmem:[#allocation3 + $0x1b8] sm:$0xff] %v1712_v54 }
  0xf0   :  { %v470_v2 = vpop.f32.mrf.mxu0  ;;  %v1690_v3 = vpop.f32.mrf.mxu1 }
  0xf1   :  { %831 = vst [vmem:[#allocation3 + $0x68] sm:$0xff] %v470_v2  ;;  %v965_v35 = vmul.f32 %v470_v2, %v470_v2  ;;  %v894_v42 = vadd.f32 %v893_v34, %v470_v2  ;;  %v1729_v19 = vpop.f32.mrf.mxu2 }
  0xf2   :  { %847 = vst [vmem:[#allocation3 + $0xe8] sm:$0xff] %v1690_v3 }
  0xf3   :  { %v1028_v58 = vadd.f32 %v1027_v38, %v965_v35  ;;  %862 = vst [vmem:[#allocation3 + $0x160] sm:$0xff] %v1729_v19  ;;  %v975_v38 = vmul.f32 %v1634_v36, %v1634_v36 }
  0xf8   :  { %v473_v20 = vpop.f32.mrf.mxu0  ;;  %v1699_v22 = vpop.f32.mrf.mxu1 }
  0xf9   :  { %832 = vst [vmem:[#allocation3 + $0x70] sm:$0xff] %v473_v20  ;;  %v966_v46 = vmul.f32 %v473_v20, %v473_v20  ;;  %v895_v50 = vadd.f32 %v894_v42, %v473_v20  ;;  %v1731_v20 = vpop.f32.mrf.mxu3 }
  0xfa   :  { %848 = vst [vmem:[#allocation3 + $0xf0] sm:$0xff] %v1699_v22 }
  0xfb   :  { %v1029_v62 = vadd.f32 %v1028_v58, %v966_v46  ;;  %874 = vst [vmem:[#allocation3 + $0x1c0] sm:$0xff] %v1731_v20  ;;  %v1747_v46 = vpop.f32.mrf.mxu2 }
  0xfc   :  { %863 = vst [vmem:[#allocation3 + $0x168] sm:$0xff] %v1747_v46 }
 0x100   :  { %v476_v59 = vpop.f32.mrf.mxu0  ;;  %v1708_v61 = vpop.f32.mrf.mxu1 }
 0x101   :  { %833 = vst [vmem:[#allocation3 + $0x78] sm:$0xff] %v476_v59  ;;  %v896_v63 = vadd.f32 %v895_v50, %v476_v59  ;;  %v967_v1 = vmul.f32 %v476_v59, %v476_v59  ;;  %v1749_v58 = vpop.f32.mrf.mxu3 }
 0x102   :  { %849 = vst [vmem:[#allocation3 + $0xf8] sm:$0xff] %v1708_v61 }
 0x103   :  { %v897_v2 = vadd.f32 %v896_v63, %v1557_v60  ;;  %v1030_v6 = vadd.f32 %v1029_v62, %v967_v1  ;;  %v971_v60 = vmul.f32 %v1590_v15, %v1590_v15  ;;  %875 = vst [vmem:[#allocation3 + $0x1c8] sm:$0xff] %v1749_v58  ;;  %v978_v63 = vmul.f32 %v1658_v47, %v1658_v47 }
 0x105   :  { %v898_v11 = vadd.f32 %v897_v2, %v1568_v0  ;;  %v1031_v12 = vadd.f32 %v1030_v6, %v968_v5  ;;  %v972_v0 = vmul.f32 %v1597_v21, %v1597_v21 }
 0x107   :  { %v899_v14 = vadd.f32 %v898_v11, %v1579_v8  ;;  %v1032_v16 = vadd.f32 %v1031_v12, %v969_v10  ;;  %v973_v8 = vmul.f32 %v1613_v28, %v1613_v28  ;;  %v1765_v10 = vpop.f32.mrf.mxu2 }
 0x108   :  { %864 = vst [vmem:[#allocation3 + $0x170] sm:$0xff] %v1765_v10 }
 0x109   :  { %v900_v17 = vadd.f32 %v899_v14, %v1590_v15  ;;  %v1033_v18 = vadd.f32 %v1032_v16, %v970_v13  ;;  %v1767_v11 = vpop.f32.mrf.mxu3  ;;  %v980_v13 = vmul.f32 %v1676_v55, %v1676_v55 }
 0x10a   :  { %876 = vst [vmem:[#allocation3 + $0x1d0] sm:$0xff] %v1767_v11 }
 0x10b   :  { %v901_v23 = vadd.f32 %v900_v17, %v1597_v21  ;;  %v1034_v25 = vadd.f32 %v1033_v18, %v971_v60  ;;  %v982_v17 = vmul.f32 %v1699_v22, %v1699_v22  ;;  %v983_v18 = vmul.f32 %v1708_v61, %v1708_v61 }
 0x10d   :  { %v902_v15 = vadd.f32 %v901_v23, %v1613_v28  ;;  %v1035_v26 = vadd.f32 %v1034_v25, %v972_v0  ;;  %v976_v28 = vmul.f32 %v1640_v39, %v1640_v39 }
 0x10f   :  { %v1036_v34 = vadd.f32 %v1035_v26, %v973_v8  ;;  %v903_v35 = vadd.f32 %v902_v15, %v1624_v32  ;;  %v977_v32 = vmul.f32 %v1649_v43, %v1649_v43  ;;  %v572_v23 = vpop.f32.mrf.mxu2  ;;  %v984_v8 = vmul.f32 %v1601_v24, %v1601_v24 }
 0x110   :  { %865 = vst [vmem:[#allocation3 + $0x178] sm:$0xff] %v572_v23 }
 0x111   :  { %v904_v21 = vadd.f32 %v903_v35, %v1634_v36  ;;  %v1037_v42 = vadd.f32 %v1036_v34, %v974_v31  ;;  %v1783_v25 = vpop.f32.mrf.mxu3 }
 0x112   :  { %877 = vst [vmem:[#allocation3 + $0x1d8] sm:$0xff] %v1783_v25 }
 0x113   :  { %v905_v50 = vadd.f32 %v904_v21, %v1640_v39  ;;  %v1038_v59 = vadd.f32 %v1037_v42, %v975_v38  ;;  %v979_v39 = vmul.f32 %v1667_v51, %v1667_v51  ;;  %v987_v38 = vmul.f32 %v1636_v37, %v1636_v37 }
 0x115   :  { %v906_v36 = vadd.f32 %v905_v50, %v1649_v43  ;;  %v1039_v62 = vadd.f32 %v1038_v59, %v976_v28 }
 0x117   :  { %v907_v1 = vadd.f32 %v906_v36, %v1658_v47  ;;  %v1040_v5 = vadd.f32 %v1039_v62, %v977_v32 }
 0x119   :  { %v908_v2 = vadd.f32 %v907_v1, %v1667_v51  ;;  %v1041_v6 = vadd.f32 %v1040_v5, %v978_v63  ;;  %v981_v51 = vmul.f32 %v1690_v3, %v1690_v3  ;;  %v1798_v42 = vpop.f32.mrf.mxu3  ;;  %v991_v63 = vmul.f32 %v1669_v52, %v1669_v52 }
 0x11a   :  { %878 = vst [vmem:[#allocation3 + $0x1e0] sm:$0xff] %v1798_v42 }
 0x11b   :  { %v1042_v43 = vadd.f32 %v1041_v6, %v979_v39  ;;  %v909_v12 = vadd.f32 %v908_v2, %v1676_v55  ;;  %v993_v6 = vmul.f32 %v1692_v7, %v1692_v7 }
 0x11d   :  { %v1043_v47 = vadd.f32 %v1042_v43, %v980_v13  ;;  %v910_v14 = vadd.f32 %v909_v12, %v1690_v3 }
 0x11f   :  { %v1044_v16 = vadd.f32 %v1043_v47, %v981_v51  ;;  %v911_v60 = vadd.f32 %v910_v14, %v1699_v22  ;;  %v985_v22 = vmul.f32 %v1616_v29, %v1616_v29  ;;  %v995_v14 = vmul.f32 %v1710_v4, %v1710_v4 }
 0x121   :  { %v1045_v0 = vadd.f32 %v1044_v16, %v982_v17  ;;  %v912_v55 = vadd.f32 %v911_v60, %v1708_v61  ;;  %v986_v61 = vmul.f32 %v1626_v33, %v1626_v33  ;;  %v996_v60 = vmul.f32 %v1729_v19, %v1729_v19 }
 0x122   :  { %v997_v17 = vmul.f32 %v1747_v46, %v1747_v46 }
 0x123   :  { %v913_v3 = vadd.f32 %v912_v55, %v1601_v24  ;;  %v1046_v15 = vadd.f32 %v1045_v0, %v983_v18  ;;  %v998_v55 = vmul.f32 %v1765_v10, %v1765_v10 }
 0x125   :  { %v914_v26 = vadd.f32 %v913_v3, %v1616_v29  ;;  %v1047_v31 = vadd.f32 %v1046_v15, %v984_v8  ;;  %v988_v29 = vmul.f32 %v1642_v40, %v1642_v40  ;;  %v999_v8 = vmul.f32 %v572_v23, %v572_v23 }
 0x127   :  { %v915_v34 = vadd.f32 %v914_v26, %v1626_v33  ;;  %v1048_v35 = vadd.f32 %v1047_v31, %v985_v22  ;;  %v989_v33 = vmul.f32 %v1651_v44, %v1651_v44  ;;  %v1000_v22 = vmul.f32 %v1644_v41, %v1644_v41 }
 0x129   :  { %v916_v24 = vadd.f32 %v915_v34, %v1636_v37  ;;  %v1049_v21 = vadd.f32 %v1048_v35, %v986_v61  ;;  %v990_v37 = vmul.f32 %v1660_v48, %v1660_v48 }
 0x12b   :  { %v917_v28 = vadd.f32 %v916_v24, %v1642_v40  ;;  %v1050_v50 = vadd.f32 %v1049_v21, %v987_v38  ;;  %v1813_v40 = vpop.f32.mrf.mxu3  ;;  %v1003_v38 = vmul.f32 %v1671_v53, %v1671_v53  ;;  %v1004_v21 = vmul.f32 %v1680_v57, %v1680_v57 }
 0x12c   :  { %879 = vst [vmem:[#allocation3 + $0x1e8] sm:$0xff] %v1813_v40 }
 0x12d   :  { %v918_v59 = vadd.f32 %v917_v28, %v1651_v44  ;;  %v1051_v32 = vadd.f32 %v1050_v50, %v988_v29  ;;  %v992_v44 = vmul.f32 %v1678_v56, %v1678_v56 }
 0x12f   :  { %v1052_v36 = vadd.f32 %v1051_v32, %v989_v33  ;;  %v919_v62 = vadd.f32 %v918_v59, %v1660_v48 }
 0x131   :  { %v920_v1 = vadd.f32 %v919_v62, %v1669_v52  ;;  %v1053_v5 = vadd.f32 %v1052_v36, %v990_v37  ;;  %v994_v52 = vmul.f32 %v1701_v27, %v1701_v27 }
 0x133   :  { %v921_v2 = vadd.f32 %v920_v1, %v1678_v56  ;;  %v1054_v39 = vadd.f32 %v1053_v5, %v991_v63  ;;  %v1828_v56 = vpop.f32.mrf.mxu3 }
 0x134   :  { %880 = vst [vmem:[#allocation3 + $0x1f0] sm:$0xff] %v1828_v56 }
 0x135   :  { %v922_v48 = vadd.f32 %v921_v2, %v1692_v7  ;;  %v1055_v43 = vadd.f32 %v1054_v39, %v992_v44  ;;  %v1011_v39 = vmul.f32 %v1783_v25, %v1783_v25 }
 0x137   :  { %v923_v12 = vadd.f32 %v922_v48, %v1701_v27  ;;  %v1056_v13 = vadd.f32 %v1055_v43, %v993_v6  ;;  %v1012_v43 = vmul.f32 %v1798_v42, %v1798_v42 }
 0x139   :  { %v924_v47 = vadd.f32 %v923_v12, %v1710_v4  ;;  %v1057_v51 = vadd.f32 %v1056_v13, %v994_v52  ;;  %v1013_v12 = vmul.f32 %v1813_v40, %v1813_v40 }
 0x13b   :  { %v1058_v16 = vadd.f32 %v1057_v51, %v995_v14  ;;  %v925_v7 = vadd.f32 %v924_v47, %v1729_v19  ;;  %v620_v15 = vpop.f32.mrf.mxu3  ;;  %v1014_v47 = vmul.f32 %v1828_v56, %v1828_v56 }
 0x13c   :  { %881 = vst [vmem:[#allocation3 + $0x1f8] sm:$0xff] %v620_v15 }
 0x13d   :  { %v1059_v27 = vadd.f32 %v1058_v16, %v996_v60  ;;  %v926_v4 = vadd.f32 %v925_v7, %v1747_v46  ;;  %1098 = dma.vmem_to_hbm [thread:$0]  %s1091_s18, 8192, %s1093_s21, [#allocation4], %s1297_s2, %s1297_s2, %s1298_s22   ;;  %v1001_v46 = vmul.f32 %v1653_v45, %v1653_v45 }
 0x13f   :  { %v1060_v18 = vadd.f32 %v1059_v27, %v997_v17  ;;  %v927_v0 = vadd.f32 %v926_v4, %v1765_v10 }
 0x141   :  { %v1061_v19 = vadd.f32 %v1060_v18, %v998_v55  ;;  %v928_v3 = vadd.f32 %v927_v0, %v572_v23  ;;  %v1002_v23 = vmul.f32 %v1662_v49, %v1662_v49 }
 0x143   :  { %v929_v26 = vadd.f32 %v928_v3, %v1644_v41  ;;  %v1062_v31 = vadd.f32 %v1061_v19, %v999_v8 }
 0x145   :  { %v930_v10 = vadd.f32 %v929_v26, %v1653_v45  ;;  %v1063_v61 = vadd.f32 %v1062_v31, %v1000_v22  ;;  %v1005_v45 = vmul.f32 %v1694_v9, %v1694_v9 }
 0x147   :  { %v931_v34 = vadd.f32 %v930_v10, %v1662_v49  ;;  %v1064_v35 = vadd.f32 %v1063_v61, %v1001_v46  ;;  %v1006_v49 = vmul.f32 %v1703_v30, %v1703_v30 }
 0x149   :  { %v932_v41 = vadd.f32 %v931_v34, %v1671_v53  ;;  %v1065_v24 = vadd.f32 %v1064_v35, %v1002_v23  ;;  %v1007_v53 = vmul.f32 %v1712_v54, %v1712_v54 }
 0x14b   :  { %v933_v29 = vadd.f32 %v932_v41, %v1680_v57  ;;  %v1066_v28 = vadd.f32 %v1065_v24, %v1003_v38  ;;  %v1008_v57 = vmul.f32 %v1731_v20, %v1731_v20 }
 0x14d   :  { %v934_v50 = vadd.f32 %v933_v29, %v1694_v9  ;;  %v1067_v33 = vadd.f32 %v1066_v28, %v1004_v21  ;;  %v1009_v9 = vmul.f32 %v1749_v58, %v1749_v58 }
 0x14f   :  { %v1068_v59 = vadd.f32 %v1067_v33, %v1005_v45  ;;  %v935_v32 = vadd.f32 %v934_v50, %v1703_v30  ;;  %v1010_v30 = vmul.f32 %v1767_v11, %v1767_v11 }
 0x151   :  { %v936_v37 = vadd.f32 %v935_v32, %v1712_v54  ;;  %v1069_v36 = vadd.f32 %v1068_v59, %v1006_v49 }
 0x153   :  { %v937_v62 = vadd.f32 %v936_v37, %v1731_v20  ;;  %v1070_v63 = vadd.f32 %v1069_v36, %v1007_v53 }
 0x155   :  { %v938_v1 = vadd.f32 %v937_v62, %v1749_v58  ;;  %v1071_v5 = vadd.f32 %v1070_v63, %v1008_v57 }
 0x157   :  { %v939_v44 = vadd.f32 %v938_v1, %v1767_v11  ;;  %v1072_v2 = vadd.f32 %v1071_v5, %v1009_v9 }
 0x159   :  { %v940_v54 = vadd.f32 %v939_v44, %v1783_v25  ;;  %v1073_v6 = vadd.f32 %v1072_v2, %v1010_v30  ;;  %v1015_v25 = vmul.f32 %v620_v15, %v620_v15 }
 0x15b   :  { %v1074_v20 = vadd.f32 %v1073_v6, %v1011_v39  ;;  %v941_v48 = vadd.f32 %v940_v54, %v1798_v42 }
 0x15d   :  { %v1075_v58 = vadd.f32 %v1074_v20, %v1012_v43  ;;  %v942_v52 = vadd.f32 %v941_v48, %v1813_v40 }
 0x15f   :  { %v1076_v11 = vadd.f32 %v1075_v58, %v1013_v12  ;;  %v943_v13 = vadd.f32 %v942_v52, %v1828_v56 }
 0x161   :  { %v1077_v14 = vadd.f32 %v1076_v11, %v1014_v47  ;;  %v944_v51 = vadd.f32 %v943_v13, %v620_v15 }
 0x163   :  { %v945_v16 = vrot.slane %v944_v51, 4  ;;  %v1078_v7 = vadd.f32 %v1077_v14, %v1015_v25 }
 0x165   :  { %v946_v60 = vadd.f32 %v945_v16, %v944_v51  ;;  %v1079_v27 = vrot.slane %v1078_v7, 4 }
 0x167   :  { %v947_v42 = vrot.slane %v946_v60, 2  ;;  %v1080_v4 = vadd.f32 %v1079_v27, %v1078_v7 }
 0x169   :  { %v948_v17 = vadd.f32 %v947_v42, %v946_v60  ;;  %v1081_v18 = vrot.slane %v1080_v4, 2 }
 0x16b   :  { %v949_v40 = vrot.slane %v948_v17, 1  ;;  %v1082_v0 = vadd.f32 %v1081_v18, %v1080_v4 }
 0x16d   :  { %v950_v56 = vadd.f32 %v949_v40, %v948_v17  ;;  %v1083_v55 = vrot.slane %v1082_v0, 1 }
 0x16f   :  { %951 = vst [vmem:[#allocation5] sm:$0x1] %v950_v56  ;;  %v1084_v8 = vadd.f32 %v1083_v55, %v1082_v0 }
 0x170   :  { %1109 = dma.vmem_to_hbm [thread:$0]  %s1105_s24, 16, %s1107_s27, [#allocation6]  }
 0x171   :  { %1085 = vst [vmem:[#allocation7] sm:$0x1] %v1084_v8 }
 0x172   :  { %1120 = dma.vmem_to_hbm [thread:$0]  %s1116_s1, 16, %s1118_s5, [#allocation6]  }
 0x173   :  { %1292 = dma.done.wait [#allocation4], 8192  }
 0x174   :  { %1293 = vsyncadd [#allocation4], 4294959104 }
 0x175   :  { %1294 = dma.done.wait [#allocation6], 32  }
 0x176   :  { %1295 = vsyncadd [#allocation6], 4294967264 }
 0x177   :  { %1133 = vsyncpa [#allocation4], 1 }
 0x178   :  { %1134 = vsyncpa [#allocation6], 1 }

</bundles_post_ra>
